<compile_context>
chip_gen: v5e
topology: v5e:2x2
jax: 0.10.0
libtpu: 0.0.40
codegen_flags: <defaults>
</compile_context>

<pallas_src>
import functools
import math

import jax
import jax.numpy as jnp
from jax.experimental import pallas as pl
from jax.experimental.pallas import tpu as pltpu


def _ce_kernel(logits_ref, labels_ref, out_ref, acc_ref, *,
               n_total, block_n, chunk_n, blocks_per_shard, apply_mask):
    """One (shard, block) step of summed cross-entropy.

    logits_ref: (block_n, C)  native dtype in VMEM
    labels_ref: (1, block_n)  int32 (lane-dense) in VMEM
    out_ref:    (1, 1)        float32 partial sum for this shard
    acc_ref:    (8, 1)        float32 per-sublane accumulator (persistent)
    """
    s = pl.program_id(0)            # shard (parallel across TensorCores on v7x)
    i = pl.program_id(1)            # block within shard (accumulating axis)
    t = s * blocks_per_shard + i    # global (unclamped) block index

    @pl.when(i == 0)
    def _():
        acc_ref[...] = jnp.zeros_like(acc_ref)

    def process_chunk(r0):
        # Cast in-kernel (VPU) instead of rewriting logits in HBM.
        logits = logits_ref[pl.ds(r0, chunk_n), :].astype(jnp.float32)   # (chunk, C)
        # Lane-dense labels -> per-row column (tiny XLU transpose).
        labels_col = jnp.transpose(labels_ref[:, pl.ds(r0, chunk_n)])    # (chunk, 1)

        # Numerically stable log-softmax with the true-class pick fused into
        # the shifted-logits pass: loss_r = log(sum(exp(x-m))) - (x[label]-m)
        m = jnp.max(logits, axis=-1, keepdims=True)                      # (chunk, 1)
        shifted = logits - m                                             # (chunk, C)
        col = jax.lax.broadcasted_iota(jnp.int32, shifted.shape, 1)
        sumexp = jnp.sum(jnp.exp(shifted), axis=-1, keepdims=True)       # (chunk, 1)
        picked = jnp.sum(jnp.where(col == labels_col, shifted, 0.0),
                         axis=-1, keepdims=True)                         # (chunk, 1)
        per_example = jnp.log(sumexp) - picked                           # (chunk, 1)

        if apply_mask:
            # Only emitted when padded extent != N; handles the partial last
            # block and fully-out-of-range (clamped duplicate) blocks.
            limit = n_total - (t * block_n + r0)
            row = jax.lax.broadcasted_iota(jnp.int32, per_example.shape, 0)
            per_example = jnp.where(row < limit, per_example, 0.0)

        # Per-sublane partial sums (VPU adds only); the single cross-sublane
        # XLU reduce happens once per shard in the finalize block below.
        if chunk_n % 8 == 0:
            acc_ref[...] += jnp.sum(
                per_example.reshape(chunk_n // 8, 8, 1), axis=0)
        else:
            acc_ref[0:1, :] += jnp.sum(per_example, axis=0, keepdims=True)

    num_chunks = block_n // chunk_n
    if num_chunks == 1:
        process_chunk(0)
    else:
        @pl.loop(0, num_chunks)
        def _(j):
            process_chunk(pl.multiple_of(j * chunk_n, chunk_n))

    @pl.when(i == pl.num_programs(1) - 1)
    def _():
        out_ref[...] = jnp.sum(acc_ref[...], axis=0, keepdims=True)


def cross_entropy_loss(logits: jax.Array, labels: jax.Array, *,
                       target_block_bytes: int = 8 * 1024 * 1024,
                       block_rows: int | None = None,
                       chunk_rows: int | None = None) -> jax.Array:
    """Equivalent of torch.nn.CrossEntropyLoss()(logits, labels) (mean)."""
    n, c = logits.shape
    itemsize = jnp.dtype(logits.dtype).itemsize
    labels_row = labels.astype(jnp.int32).reshape(1, n)   # lane-dense labels

    simple = (block_rows is None and chunk_rows is None
              and n * c * 4 <= 2 * 1024 * 1024)
    if simple:
        # Whole problem is tiny: one full block, one chunk, no padding at all.
        block_n = n
        chunk_n = n
    else:
        # Rows per in-kernel compute chunk (~256 KiB of f32 intermediates).
        if chunk_rows is None:
            chunk_n = max(8, min(512, (256 * 1024) // max(1, c * 4)))
            chunk_n = 1 << (int(chunk_n).bit_length() - 1)   # pow2, >= 8
        else:
            chunk_n = max(8, (int(chunk_rows) // 8) * 8)
        # Block granularity: multiple of chunk_n (exact chunk loop) and of 128
        # (lane constraint on the (1, block_n) labels block).
        unit = (chunk_n * 128) // math.gcd(chunk_n, 128)
        rows = (target_block_bytes // max(1, c * itemsize)
                if block_rows is None else int(block_rows))
        block_n = max(unit, (rows // unit) * unit)
        block_n = min(block_n, pl.cdiv(n, unit) * unit)   # never more than needed

    num_blocks = pl.cdiv(n, block_n)
    num_shards = 2 if num_blocks >= 2 else 1   # v7x: one shard per TensorCore
    blocks_per_shard = pl.cdiv(num_blocks, num_shards)
    apply_mask = (num_shards * blocks_per_shard * block_n) != n

    def logits_map(s, i):
        return (jnp.minimum(s * blocks_per_shard + i, num_blocks - 1), 0)

    def labels_map(s, i):
        return (0, jnp.minimum(s * blocks_per_shard + i, num_blocks - 1))

    # Explicit VMEM budget: 2 double-buffered logits blocks + 2 (small,
    # lane-dense) labels blocks + slack for chunk intermediates.
    logits_block_bytes = block_n * c * itemsize
    labels_block_bytes = 8 * pl.cdiv(block_n, 128) * 128 * 4
    vmem_limit = 2 * logits_block_bytes + 2 * labels_block_bytes + (8 << 20)
    vmem_limit = max(int(vmem_limit), 16 << 20)

    cost = pl.CostEstimate(
        flops=6 * n * c,
        transcendentals=n * c + n,            # exp per element + log per row
        bytes_accessed=n * c * itemsize + n * 4 + num_shards * 4,
    )

    kernel = functools.partial(
        _ce_kernel, n_total=n, block_n=block_n, chunk_n=chunk_n,
        blocks_per_shard=blocks_per_shard, apply_mask=apply_mask)

    partial_sums = pl.pallas_call(
        kernel,
        out_shape=jax.ShapeDtypeStruct((num_shards, 1), jnp.float32),
        grid=(num_shards, blocks_per_shard),
        in_specs=[
            pl.BlockSpec((block_n, c), logits_map),     # logits block
            pl.BlockSpec((1, block_n), labels_map),     # lane-dense labels block
        ],
        out_specs=pl.BlockSpec((1, 1), lambda s, i: (s, 0)),
        scratch_shapes=[pltpu.VMEM((8, 1), jnp.float32)],
        compiler_params=pltpu.CompilerParams(
            dimension_semantics=("parallel", "arbitrary"),
            vmem_limit_bytes=vmem_limit,
        ),
        cost_estimate=cost,
    )(logits, labels_row)

    # Final tiny reduction + mean in plain XLA.
    return jnp.sum(partial_sums) / n


def _reference(logits_f32, labels):
    lse = jax.nn.logsumexp(logits_f32, axis=-1)
    picked = jnp.take_along_axis(logits_f32, labels[:, None], axis=-1)[:, 0]
    return jnp.mean(lse - picked)


if __name__ == "__main__":
    key = jax.random.PRNGKey(0)
    k1, k2, k3, k4 = jax.random.split(key, 4)

    # Small shape: batch=48, 128 classes (lane-dense), bf16 logits read natively.
    N, C = 48, 128
    logits = jax.random.normal(k1, (N, C), dtype=jnp.float32).astype(jnp.bfloat16)
    labels = jax.random.randint(k2, (N,), 0, C, dtype=jnp.int32)
    ref = _reference(logits.astype(jnp.float32), labels)
    loss = cross_entropy_loss(logits, labels)
    jax.block_until_ready(loss)
    assert jnp.allclose(loss, ref, atol=1e-4, rtol=1e-4), (loss, ref)

    # Larger run exercising the multi-block grid, 2-way TensorCore shard axis,
    # in-kernel chunk loop, block-index clamping and the partial-tile mask.
    N2, C2 = 768, 128
    logits2 = jax.random.normal(k3, (N2, C2), dtype=jnp.float32).astype(jnp.bfloat16)
    labels2 = jax.random.randint(k4, (N2,), 0, C2, dtype=jnp.int32)
    ref2 = _reference(logits2.astype(jnp.float32), labels2)
    loss2 = cross_entropy_loss(logits2, labels2, block_rows=256, chunk_rows=128)
    jax.block_until_ready(loss2)
    assert jnp.allclose(loss2, ref2, atol=1e-4, rtol=1e-4), (loss2, ref2)

    print("KERNEL_OK")
</pallas_src>

<mosaic_0001>
module attributes {stable_mosaic.version = 11 : i64} {
  func.func @_ce_kernel(%arg0: i32, %arg1: i32, %arg2: memref<48x128xbf16, #tpu.memory_space<vmem>>, %arg3: memref<1x48xi32, #tpu.memory_space<vmem>>, %arg4: memref<1x1xf32, #tpu.memory_space<vmem>>, %arg5: memref<8x1xf32, #tpu.memory_space<vmem>>) attributes {dimension_semantics = [#tpu.dimension_semantics<parallel>, #tpu.dimension_semantics<arbitrary>], iteration_bounds = array<i64: 1, 1>, scalar_prefetch = 0 : i64, scratch_operands = 1 : i64, tpu.core_type = #tpu.core_type<tc>, window_params = [{transform_indices = @transform_0, window_bounds = array<i64: 48, 128>}, {transform_indices = @transform_1, window_bounds = array<i64: 1, 48>}, {transform_indices = @transform_2, window_bounds = array<i64: 1, 1>}]} {
    %c0_i32 = arith.constant 0 : i32
    %0 = arith.cmpi eq, %arg1, %c0_i32 : i32
    %1 = arith.extui %0 : i1 to i32
    %c0_i32_0 = arith.constant 0 : i32
    %2 = arith.cmpi ne, %1, %c0_i32_0 : i32
    scf.if %2 {
      %cst_14 = arith.constant 0.000000e+00 : f32
      %31 = vector.broadcast %cst_14 : f32 to vector<8x1xf32>
      %c0_15 = arith.constant 0 : index
      %c0_16 = arith.constant 0 : index
      %32 = vector.load %arg5[%c0_15, %c0_16] : memref<8x1xf32, #tpu.memory_space<vmem>>, vector<8x1xf32>
      tpu.vector_store %arg5[%c0_15, %c0_16], %31 {strides = array<i32>} : memref<8x1xf32, #tpu.memory_space<vmem>>, vector<8x1xf32>,
    } else {
    }
    %c0 = arith.constant 0 : index
    %c0_1 = arith.constant 0 : index
    %3 = vector.load %arg2[%c0, %c0_1] : memref<48x128xbf16, #tpu.memory_space<vmem>>, vector<48x128xbf16>
    %4 = arith.extf %3 : vector<48x128xbf16> to vector<48x128xf32>
    %c0_2 = arith.constant 0 : index
    %c0_3 = arith.constant 0 : index
    %5 = vector.load %arg3[%c0_2, %c0_3] : memref<1x48xi32, #tpu.memory_space<vmem>>, vector<1x48xi32>
    %6 = tpu.transpose %5, [1, 0] : vector<1x48xi32> -> vector<48x1xi32>
    %cst = arith.constant dense<0xFF800000> : vector<48xf32>
    %7 = vector.multi_reduction <maximumf>, %4, %cst [1] : vector<48x128xf32> to vector<48xf32>
    %8 = vector.shape_cast %7 : vector<48xf32> to vector<48x1xf32>
    %9 = vector.broadcast %8 : vector<48x1xf32> to vector<48x128xf32>
    %10 = arith.subf %4, %9 : vector<48x128xf32>
    %11 = tpu.iota {dimensions = array<i32: 1>} : vector<48x128xi32>
    %12 = math.exp %10 : vector<48x128xf32>
    %cst_4 = arith.constant dense<0.000000e+00> : vector<48xf32>
    %13 = vector.multi_reduction <add>, %12, %cst_4 [1] : vector<48x128xf32> to vector<48xf32>
    %14 = vector.shape_cast %13 : vector<48xf32> to vector<48x1xf32>
    %15 = vector.broadcast %6 : vector<48x1xi32> to vector<48x128xi32>
    %16 = arith.cmpi eq, %11, %15 : vector<48x128xi32>
    %cst_5 = arith.constant 0.000000e+00 : f32
    %17 = vector.broadcast %cst_5 : f32 to vector<48x128xf32>
    %18 = arith.select %16, %10, %17 : vector<48x128xi1>, vector<48x128xf32>
    %cst_6 = arith.constant dense<0.000000e+00> : vector<48xf32>
    %19 = vector.multi_reduction <add>, %18, %cst_6 [1] : vector<48x128xf32> to vector<48xf32>
    %20 = vector.shape_cast %19 : vector<48xf32> to vector<48x1xf32>
    %21 = math.log %14 : vector<48x1xf32>
    %22 = arith.subf %21, %20 : vector<48x1xf32>
    %c0_7 = arith.constant 0 : index
    %c0_8 = arith.constant 0 : index
    %23 = vector.load %arg5[%c0_7, %c0_8] : memref<8x1xf32, #tpu.memory_space<vmem>>, vector<8x1xf32>
    %24 = vector.shape_cast %22 : vector<48x1xf32> to vector<6x8x1xf32>
    %cst_9 = arith.constant dense<0.000000e+00> : vector<8x1xf32>
    %25 = vector.multi_reduction <add>, %24, %cst_9 [0] : vector<6x8x1xf32> to vector<8x1xf32>
    %26 = arith.addf %23, %25 : vector<8x1xf32>
    %c0_10 = arith.constant 0 : index
    %c0_11 = arith.constant 0 : index
    %27 = vector.load %arg5[%c0_10, %c0_11] : memref<8x1xf32, #tpu.memory_space<vmem>>, vector<8x1xf32>
    tpu.vector_store %arg5[%c0_10, %c0_11], %26 {strides = array<i32>} : memref<8x1xf32, #tpu.memory_space<vmem>>, vector<8x1xf32>,
    %c0_i32_12 = arith.constant 0 : i32
    %28 = arith.cmpi eq, %arg1, %c0_i32_12 : i32
    %29 = arith.extui %28 : i1 to i32
    %c0_i32_13 = arith.constant 0 : i32
    %30 = arith.cmpi ne, %29, %c0_i32_13 : i32
    scf.if %30 {
      %c0_14 = arith.constant 0 : index
      %c0_15 = arith.constant 0 : index
      %31 = vector.load %arg5[%c0_14, %c0_15] : memref<8x1xf32, #tpu.memory_space<vmem>>, vector<8x1xf32>
      %cst_16 = arith.constant dense<0.000000e+00> : vector<1xf32>
      %32 = vector.multi_reduction <add>, %31, %cst_16 [0] : vector<8x1xf32> to vector<1xf32>
      %33 = vector.shape_cast %32 : vector<1xf32> to vector<1x1xf32>
      %c0_17 = arith.constant 0 : index
      %c0_18 = arith.constant 0 : index
      %34 = vector.load %arg4[%c0_17, %c0_18] : memref<1x1xf32, #tpu.memory_space<vmem>>, vector<1x1xf32>
      tpu.vector_store %arg4[%c0_17, %c0_18], %33 {strides = array<i32>} : memref<1x1xf32, #tpu.memory_space<vmem>>, vector<1x1xf32>,
    } else {
    }
    return
  }
  func.func @transform_0(%arg0: i32, %arg1: i32) -> (i32, i32) {
    %c1_i32 = arith.constant 1 : i32
    %0 = arith.muli %arg0, %c1_i32 : i32
    %1 = arith.addi %0, %arg1 : i32
    %c0_i32 = arith.constant 0 : i32
    %2 = arith.minsi %1, %c0_i32 : i32
    %c0_i32_0 = arith.constant 0 : i32
    %c0_i32_1 = arith.constant 0 : i32
    return %2, %c0_i32_0 : i32, i32
  }
  func.func @transform_1(%arg0: i32, %arg1: i32) -> (i32, i32) {
    %c1_i32 = arith.constant 1 : i32
    %0 = arith.muli %arg0, %c1_i32 : i32
    %1 = arith.addi %0, %arg1 : i32
    %c0_i32 = arith.constant 0 : i32
    %2 = arith.minsi %1, %c0_i32 : i32
    %c0_i32_0 = arith.constant 0 : i32
    %c0_i32_1 = arith.constant 0 : i32
    return %c0_i32_0, %2 : i32, i32
  }
  func.func @transform_2(%arg0: i32, %arg1: i32) -> (i32, i32) {
    %c0_i32 = arith.constant 0 : i32
    %c0_i32_0 = arith.constant 0 : i32
    return %arg0, %c0_i32 : i32, i32
  }
}

</mosaic_0001>

<bundles_post_ra>
// kernel: tpu_custom_call.1
= control target key start
LH: loop header
LB: loop body
LE: loop exit
PB: predicated region body
PF: predicated region fallthrough
CT: control target
= control target key end

     0   :  { %7 = vsyncpa [#allocation4], 0  ;;  %s417_s0 = inlined_call_operand.hbm [shape: bf16[48,128], index: 0, kind: input, shape index: {}]   ;;  %s418_s1 = inlined_call_operand.hbm [shape: s32[1,48], index: 1, kind: input, shape index: {}]   ;;  %s419_s2 = inlined_call_operand.hbm [shape: f32[1,1], index: 2, kind: output, shape index: {}]  }
   0x1   :  { %8 = vsyncpa [#allocation7], 0 }
   0x2   :  { %9 = vsyncpa [#allocation5], 0  ;;  %s20_s11 = sshll.u32 %s417_s0, 4  ;;  %s383_s12 = smov [#allocation3]   ;;  %s21_s11 = int_to_ptr.hbm [resolvable:$true] %s20_s11 }
   0x3   :  { %s22_s13 = sshll.u32 %s383_s12, 4  ;;  %s38_s16 = sshll.u32 %s418_s1, 4  ;;  %s23_s13 = int_to_ptr.vmem [resolvable:$true] %s22_s13  ;;  %s39_s16 = int_to_ptr.hbm [resolvable:$true] %s38_s16 }
   0x4   :  { %s384_s17 = smov 64   ;;  %s385_s18 = smov 4  }
   0x5   :  { %28 = dma.hbm_to_vmem [thread:$0]  %s21_s11, 384, %s23_s13, [#allocation4], %s384_s17, %s384_s17, %s385_s18  }
   0x6   :  { %s386_s19 = smov [#allocation6]  }
   0x7   :  { %s40_s20 = sshll.u32 %s386_s19, 4  ;;  %s41_s20 = int_to_ptr.vmem [resolvable:$true] %s40_s20 }
   0x8   :  { %43 = dma.hbm_to_vmem [thread:$0]  %s39_s16, 16, %s41_s20, [#allocation7]  }
   0x9   :  { %377 = dma.done.wait [#allocation4], 384  }
   0xa   :  { %378 = vsyncadd [#allocation4], 4294966912 }
   0xb   :  { %379 = dma.done.wait [#allocation7], 16  }
   0xc   :  { %380 = vsyncadd [#allocation7], 4294967280  ;;  %v77_v0 = vld [vmem:[#allocation6] sm:$0x1]  ;;  %v269_v1 = vld [vmem:[#allocation3 + $0x8] sm:$0xff]   ;;  %v387_v9 = vmov 0   ;;  %v128_v40 = vlaneseq }
   0xd   :  { %v258_v2 = vld [vmem:[#allocation3] sm:$0xff]   ;;  %78 = vxpose.xlu0.b32.start.end [1/1] (short) (narrow) %v77_v0, 48  ;;  %v264_v3 = vunpack.c.h.bf16 %v269_v1  ;;  %v270_v5 = vld [vmem:[#allocation3 + $0x10] sm:$0xff]   ;;  %v263_v7 = vunpack.c.l.bf16 %v269_v1  ;;  %278 = vset.pattern.permute.xlu2 %v387_v9  ;;  %vm63_vm6 = vcmask 7168   ;;  %v388_v58 = vmov 0.0   ;;  %s389_s0 = smov [#allocation8]  }
   0xe   :  { %v260_v4 = vunpack.c.h.bf16 %v258_v2  ;;  %v267_v6 = vunpack.c.l.bf16 %v270_v5  ;;  %v268_v8 = vunpack.c.h.bf16 %v270_v5  ;;  %279 = vset.pattern.permute.xlu1 %v387_v9  ;;  %v259_v10 = vunpack.c.l.bf16 %v258_v2  ;;  %64 = vst.msk [vmem:[#allocation2] sm:$0xff] %vm63_vm6, %v388_v58  ;;  %s241_s1 = sshll.u32 %s389_s0, 4  ;;  %s243_s23 = sshll.u32 %s419_s2, 4  ;;  %s242_s1 = int_to_ptr.vmem [resolvable:$true] %s241_s1  ;;  %s244_s23 = int_to_ptr.hbm [resolvable:$true] %s243_s23 }
   0xf   :  { %116 = vmax.xlane.f32.xlu2 %v264_v3  ;;  %v129_v42 = vand.u32 127, %v128_v40  ;;  %vm234_vm7 = vcmask 0  }
  0x10   :  { %112 = vmax.xlane.f32.xlu1 %v260_v4 }
  0x17   :  { %118 = vmax.xlane.f32.xlu2 %v267_v6 }
  0x18   :  { %114 = vmax.xlane.f32.xlu1 %v263_v7 }
  0x20   :  { %120 = vmax.xlane.f32.xlu1 %v268_v8 }
  0x74   :  { %280 = vset.pattern.permute.xlu0 %v387_v9 }
  0x82   :  { %v117_v21 = vpop.xlane.xlu2 %116 }
  0x83   :  { %v113_v17 = vpop.xlane.xlu1 %112  ;;  %v125_v22 = vsub.f32 %v264_v3, %v117_v21 }
  0x84   :  { %v123_v18 = vsub.f32 %v260_v4, %v113_v17 }
  0x85   :  { %v136_v23 = vmul.f32 1.442695, %v125_v22 }
  0x86   :  { %v132_v20 = vmul.f32 1.442695, %v123_v18 }
  0x88   :  { %281 = vpow2.f32 %v132_v20 }
  0x89   :  { %283 = vpow2.f32 %v136_v23 }
  0x8a   :  { %v119_v30 = vpop.xlane.xlu2 %118 }
  0x8b   :  { %v115_v19 = vpop.xlane.xlu1 %114  ;;  %v126_v38 = vsub.f32 %v267_v6, %v119_v30 }
  0x8c   :  { %v124_v35 = vsub.f32 %v263_v7, %v115_v19 }
  0x8d   :  { %v138_v41 = vmul.f32 1.442695, %v126_v38 }
  0x8e   :  { %v282_v25 = vpop.eup %281  ;;  %v134_v36 = vmul.f32 1.442695, %v124_v35 }
  0x8f   :  { %v284_v28 = vpop.eup %283 }
  0x93   :  { %v121_v24 = vpop.xlane.xlu1 %120 }
  0x94   :  { %v127_v26 = vsub.f32 %v268_v8, %v121_v24 }
  0x96   :  { %v140_v27 = vmul.f32 1.442695, %v127_v26 }
  0x98   :  { %285 = vpow2.f32 %v140_v27 }
  0x9e   :  { %v286_v29 = vpop.eup %285 }
  0xa6   :  { %110 = vmax.xlane.f32.xlu0 %v259_v10 }
  0xb1   :  { %v94_v11 = vpop.trf.xlu0 }
  0xb2   :  { %155 = vperm.xlu2 %278, %v94_v11  }
  0xb9   :  { %v95_v12 = vpop.trf.xlu0 }
  0xba   :  { %158 = vperm.xlu1 %279, %v95_v12  }
  0xc1   :  { %v96_v13 = vpop.trf.xlu0 }
  0xc2   :  { %161 = vperm.xlu2 %278, %v96_v13  }
  0xc9   :  { %v97_v14 = vpop.trf.xlu0 }
  0xca   :  { %164 = vperm.xlu2 %278, %v97_v14  }
  0xd1   :  { %v98_v15 = vpop.trf.xlu0 }
  0xd2   :  { %167 = vperm.xlu1 %279, %v98_v15  }
  0xd9   :  { %v99_v16 = vpop.trf.xlu0 }
  0xda   :  { %170 = vperm.xlu2 %278, %v99_v16  }
 0x103   :  { %144 = vadd.xlane.f32.xlu2 %v282_v25 }
 0x10b   :  { %148 = vadd.xlane.f32.xlu2 %v284_v28 }
 0x10c   :  { %v156_v34 = vpop.permute.xlu2 %155 }
 0x10d   :  { %vm172_vm2 = vcmp.eq.s32.totalorder %v129_v42, %v156_v34 }
 0x113   :  { %152 = vadd.xlane.f32.xlu2 %v286_v29 }
 0x119   :  { %v111_v31 = vpop.xlane.xlu0 %110 }
 0x11a   :  { %v122_v32 = vsub.f32 %v259_v10, %v111_v31 }
 0x11c   :  { %v130_v33 = vmul.f32 1.442695, %v122_v32  ;;  %v162_v39 = vpop.permute.xlu2 %161  ;;  %v178_v50 = vsel %vm172_vm2, %v122_v32, 0.0 }
 0x11d   :  { %vm174_vm4 = vcmp.eq.s32.totalorder %v129_v42, %v162_v39 }
 0x11e   :  { %287 = vpow2.f32 %v130_v33  ;;  %v180_v52 = vsel %vm174_vm4, %v124_v35, 0.0 }
 0x11f   :  { %289 = vpow2.f32 %v134_v36 }
 0x120   :  { %291 = vpow2.f32 %v138_v41 }
 0x124   :  { %v288_v37 = vpop.eup %287  ;;  %v165_v46 = vpop.permute.xlu2 %164 }
 0x125   :  { %142 = vadd.xlane.f32.xlu1 %v288_v37  ;;  %v290_v43 = vpop.eup %289  ;;  %vm175_vm1 = vcmp.eq.s32.totalorder %v129_v42, %v165_v46 }
 0x126   :  { %v292_v47 = vpop.eup %291  ;;  %v181_v48 = vsel %vm175_vm1, %v125_v22, 0.0 }
 0x12c   :  { %v159_v44 = vpop.permute.xlu1 %158 }
 0x12d   :  { %vm173_vm0 = vcmp.eq.s32.totalorder %v129_v42, %v159_v44  ;;  %146 = vadd.xlane.f32.xlu1 %v290_v43 }
 0x12e   :  { %v179_v45 = vsel %vm173_vm0, %v123_v18, 0.0 }
 0x12f   :  { %186 = vadd.xlane.f32.xlu2 %v179_v45 }
 0x134   :  { %v171_v49 = vpop.permute.xlu2 %170 }
 0x135   :  { %150 = vadd.xlane.f32.xlu1 %v292_v47  ;;  %vm177_vm3 = vcmp.eq.s32.totalorder %v129_v42, %v171_v49 }
 0x136   :  { %v183_v51 = vsel %vm177_vm3, %v127_v26, 0.0  ;;  %v214_v26 = vld [vmem:[#allocation2] sm:$0xff] }
 0x137   :  { %190 = vadd.xlane.f32.xlu2 %v181_v48 }
 0x13d   :  { %184 = vadd.xlane.f32.xlu1 %v178_v50 }
 0x13f   :  { %194 = vadd.xlane.f32.xlu2 %v183_v51 }
 0x144   :  { %v168_v53 = vpop.permute.xlu1 %167 }
 0x145   :  { %188 = vadd.xlane.f32.xlu1 %v180_v52  ;;  %vm176_vm5 = vcmp.eq.s32.totalorder %v129_v42, %v168_v53 }
 0x146   :  { %v182_v54 = vsel %vm176_vm5, %v126_v38, 0.0 }
 0x14d   :  { %192 = vadd.xlane.f32.xlu1 %v182_v54 }
 0x176   :  { %v145_v55 = vpop.xlane.xlu2 %144 }
 0x17e   :  { %v149_v56 = vpop.xlane.xlu2 %148 }
 0x186   :  { %v153_v60 = vpop.xlane.xlu2 %152 }
 0x198   :  { %v143_v57 = vpop.xlane.xlu1 %142 }
 0x199   :  { %293 = vlog2.f32 %v143_v57 }
 0x19a   :  { %295 = vlog2.f32 %v145_v55 }
 0x19f   :  { %v294_v0 = vpop.eup %293 }
 0x1a0   :  { %v147_v59 = vpop.xlane.xlu1 %146  ;;  %v296_v1 = vpop.eup %295  ;;  %v197_v3 = vmul.f32 0.6931472, %v294_v0 }
 0x1a1   :  { %297 = vlog2.f32 %v147_v59  ;;  %v199_v5 = vmul.f32 0.6931472, %v296_v1 }
 0x1a2   :  { %v187_v62 = vpop.xlane.xlu2 %186  ;;  %299 = vlog2.f32 %v149_v56 }
 0x1a3   :  { %v209_v10 = vsub.f32 %v199_v5, %v187_v62 }
 0x1a7   :  { %v298_v2 = vpop.eup %297 }
 0x1a8   :  { %v151_v61 = vpop.xlane.xlu1 %150  ;;  %v201_v6 = vmul.f32 0.6931472, %v298_v2  ;;  %v300_v8 = vpop.eup %299 }
 0x1a9   :  { %301 = vlog2.f32 %v151_v61  ;;  %v203_v12 = vmul.f32 0.6931472, %v300_v8 }
 0x1aa   :  { %v191_v4 = vpop.xlane.xlu2 %190  ;;  %303 = vlog2.f32 %v153_v60 }
 0x1ab   :  { %v211_v18 = vsub.f32 %v203_v12, %v191_v4 }
 0x1af   :  { %v302_v14 = vpop.eup %301 }
 0x1b0   :  { %v185_v63 = vpop.xlane.xlu1 %184  ;;  %v304_v16 = vpop.eup %303  ;;  %v205_v17 = vmul.f32 0.6931472, %v302_v14 }
 0x1b1   :  { %v208_v7 = vsub.f32 %v197_v3, %v185_v63  ;;  %v207_v21 = vmul.f32 0.6931472, %v304_v16 }
 0x1b2   :  { %v195_v19 = vpop.xlane.xlu2 %194 }
 0x1b3   :  { %v215_v13 = vadd.f32 %v209_v10, %v208_v7  ;;  %v213_v24 = vsub.f32 %v207_v21, %v195_v19 }
 0x1b8   :  { %v189_v9 = vpop.xlane.xlu1 %188 }
 0x1b9   :  { %v210_v11 = vsub.f32 %v201_v6, %v189_v9 }
 0x1bb   :  { %v216_v15 = vadd.f32 %v215_v13, %v210_v11 }
 0x1bd   :  { %v217_v22 = vadd.f32 %v216_v15, %v211_v18 }
 0x1c0   :  { %v193_v20 = vpop.xlane.xlu1 %192 }
 0x1c1   :  { %v212_v23 = vsub.f32 %v205_v17, %v193_v20 }
 0x1c3   :  { %v218_v25 = vadd.f32 %v217_v22, %v212_v23 }
 0x1c5   :  { %v219_v27 = vadd.f32 %v218_v25, %v213_v24 }
 0x1c7   :  { %v220_v28 = vadd.f32 %v219_v27, %v214_v26 }
 0x1c9   :  { %222 = vst.msk [vmem:[#allocation2] sm:$0xff] %vm63_vm6, %v220_v28 }
 0x1d0   :  { %v226_v29 = vld [vmem:[#allocation2] sm:$0xff] }
 0x1d1   :  { %v227_v30 = vsel %vm63_vm6, %v226_v29, 0.0 }
 0x1d2   :  { %v228_v31 = vrot.slane %v227_v30, 4 }
 0x1d4   :  { %v229_v32 = vadd.f32 %v228_v31, %v227_v30 }
 0x1d6   :  { %v230_v33 = vrot.slane %v229_v32, 2 }
 0x1d8   :  { %v231_v34 = vadd.f32 %v230_v33, %v229_v32 }
 0x1da   :  { %v232_v35 = vrot.slane %v231_v34, 1 }
 0x1dc   :  { %v233_v36 = vadd.f32 %v232_v35, %v231_v34 }
 0x1de   :  { %235 = vst.msk [vmem:[#allocation8] sm:$0x1] %vm234_vm7, %v233_v36 }
 0x1df   :  { %246 = dma.vmem_to_hbm [thread:$0]  %s242_s1, 16, %s244_s23, [#allocation5]  }
 0x1e0   :  { %381 = dma.done.wait [#allocation5], 16  }
 0x1e1   :  { %382 = vsyncadd [#allocation5], 4294967280 }
 0x1e2   :  { %251 = vsyncpa [#allocation4], 1 }
 0x1e3   :  { %252 = vsyncpa [#allocation7], 1 }
 0x1e4   :  { %253 = vsyncpa [#allocation5], 1 }

</bundles_post_ra>
